<compile_context>
chip_gen: v7x
topology: tpu7x:2x2x1
jax: 0.10.0
libtpu: 0.0.40
codegen_flags: <defaults>
</compile_context>

<pallas_src>
import functools

import jax
import jax.numpy as jnp
from jax.experimental import pallas as pl
from jax.experimental.pallas import tpu as pltpu


_NEG_LARGE = jnp.finfo(jnp.float32).min


def _ce_kernel(logits_ref, target_ref, loss_ref, m_sc, s_sc, tl_sc, *,
               ignore_index, block_c, c_total):
    ci = pl.program_id(1)
    num_c = pl.num_programs(1)

    @pl.when(ci == 0)
    def _():
        m_sc[...] = jnp.full_like(m_sc, _NEG_LARGE)
        s_sc[...] = jnp.zeros_like(s_sc)
        tl_sc[...] = jnp.zeros_like(tl_sc)

    x_nat = logits_ref[...]                                     # (tn, tc) native dtype
    t = target_ref[...]                                         # (tn, 1) int32
    t_loc = t - ci * block_c                                    # (tn, 1) tile-local target col
    col = jax.lax.broadcasted_iota(jnp.int32, x_nat.shape, 1)   # tile-local column ids

    # --- target-logit gather: select in the NATIVE dtype (cheap bf16 VPU path),
    #     reduce to (tn, 1), accumulate in f32. ignore_index (-100) and padded
    #     tail columns can never match a valid t_loc, so no extra masking needed.
    hit = jnp.where(col == t_loc, x_nat, jnp.zeros_like(x_nat))
    tl_sc[...] = tl_sc[...] + jnp.sum(hit, axis=-1, keepdims=True,
                                      dtype=jnp.float32)

    # --- online logsumexp over the C axis (f32 temporaries live only in VMEM) ---
    x = x_nat.astype(jnp.float32)
    c_rem = c_total % block_c
    if c_rem:  # static: tail masking only emitted when block_c doesn't divide C
        limit = jnp.where(ci == num_c - 1, c_rem, block_c)
        x = jnp.where(col < limit, x, _NEG_LARGE)
    m_old = m_sc[...]
    m_new = jnp.maximum(m_old, jnp.max(x, axis=-1, keepdims=True))
    s_sc[...] = (s_sc[...] * jnp.exp(m_old - m_new)
                 + jnp.sum(jnp.exp(x - m_new), axis=-1, keepdims=True))
    m_sc[...] = m_new

    @pl.when(ci == num_c - 1)
    def _():
        lse = m_sc[...] + jnp.log(s_sc[...])                    # (tn, 1)
        valid = (t != ignore_index).astype(jnp.float32)         # (tn, 1)
        loss_ref[...] = (lse - tl_sc[...]) * valid              # masked NLL per row


def _round_up(x, m):
    return ((x + m - 1) // m) * m


def _default_block_n(n):
    # Multiples of 16 (bf16 packs 2 rows/sublane); prefer >= 2 blocks along N
    # so the "parallel" axis can spread across v7x's two TensorCores.
    for bn in (128, 64, 32, 16):
        if pl.cdiv(n, bn) >= 2:
            return bn
    return min(16, _round_up(n, 8))


def _default_block_c(c, itemsize):
    # Large C tiles for contiguous DMA strips; capped so the full-tile f32
    # temporaries (cast/exp/select) still fit v7x's 64 MiB VMEM with block_n=128.
    cap = 4096 if itemsize < 4 else 2048
    return min(cap, _round_up(c, 128))


def cross_entropy_loss(logits, targets, *, ignore_index=-100,
                       block_n=None, block_c=None):
    """logits: (N, C) float (any float dtype), targets: (N,) int -> scalar f32.

    Matches torch.nn.CrossEntropyLoss(weight=None, ignore_index=-100,
    reduction='elementwise_mean').
    """
    n, c = logits.shape
    t2d = targets.reshape(n, 1).astype(jnp.int32)
    itemsize = jnp.dtype(logits.dtype).itemsize

    if block_n is None:
        block_n = _default_block_n(n)
    if block_c is None:
        block_c = _default_block_c(c, itemsize)
    block_n = _round_up(block_n, 8)
    block_c = _round_up(block_c, 128)

    grid = (pl.cdiv(n, block_n), pl.cdiv(c, block_c))

    # VMEM budget: double-buffered native-dtype logits tile + f32 temporaries
    # from the cast / exp / select, plus headroom; cap at 48 MiB for v7x.
    budget = (2 * block_n * block_c * itemsize
              + 4 * block_n * block_c * 4
              + (1 << 20))
    vmem_limit = int(min(48 << 20, max(32 << 20, budget)))

    loss_rows = pl.pallas_call(
        functools.partial(_ce_kernel, ignore_index=ignore_index,
                          block_c=block_c, c_total=c),
        grid_spec=pltpu.PrefetchScalarGridSpec(
            num_scalar_prefetch=0,
            grid=grid,
            in_specs=[
                pl.BlockSpec((block_n, block_c), lambda i, ci: (i, ci)),
                pl.BlockSpec((block_n, 1), lambda i, ci: (i, 0)),
            ],
            out_specs=pl.BlockSpec((block_n, 1), lambda i, ci: (i, 0)),
            scratch_shapes=[
                pltpu.VMEM((block_n, 1), jnp.float32),   # running max
                pltpu.VMEM((block_n, 1), jnp.float32),   # running sum(exp)
                pltpu.VMEM((block_n, 1), jnp.float32),   # running target logit
            ],
        ),
        out_shape=jax.ShapeDtypeStruct((n, 1), jnp.float32),
        compiler_params=pltpu.CompilerParams(
            dimension_semantics=("parallel", "arbitrary"),
            vmem_limit_bytes=vmem_limit,
        ),
    )(logits, t2d)   # native dtype streamed from HBM; f32 cast happens in VMEM

    total = jnp.sum(loss_rows)
    count = jnp.sum((targets != ignore_index).astype(jnp.float32))
    # 'elementwise_mean' with weight=None: mean over non-ignored rows.
    # (All rows ignored -> NaN, matching PyTorch.)
    return total / count


def _reference(logits, targets, ignore_index=-100):
    logits = logits.astype(jnp.float32)
    logp = jax.nn.log_softmax(logits, axis=-1)
    safe_t = jnp.where(targets == ignore_index, 0, targets).astype(jnp.int32)
    nll = -jnp.take_along_axis(logp, safe_t[:, None], axis=-1)[:, 0]
    valid = (targets != ignore_index).astype(jnp.float32)
    return jnp.sum(nll * valid) / jnp.sum(valid)


if __name__ == "__main__":
    # CrossEntropyLoss() has no learnable parameters (weight buffer is None).
    key = jax.random.PRNGKey(0)
    k1, k2, k3, k4, k5, k6 = jax.random.split(key, 6)

    # --- test 1: small single-block case, f32, with an ignored row.
    #     C=32 < 128 exercises the padded-C-tail mask path.
    N1, C1 = 8, 32
    logits1 = jax.random.normal(k1, (N1, C1), dtype=jnp.float32)
    targets1 = jax.random.randint(k2, (N1,), 0, C1, dtype=jnp.int32)
    targets1 = targets1.at[3].set(-100)
    loss1 = cross_entropy_loss(logits1, targets1)
    jax.block_until_ready(loss1)
    ref1 = _reference(logits1, targets1)
    assert jnp.allclose(loss1, ref1, atol=1e-5, rtol=1e-5), (loss1, ref1)

    # --- test 2: tiled case (grid 2x2), bf16 logits, online-LSE path exercised.
    N2, C2 = 16, 256
    logits2 = jax.random.normal(k3, (N2, C2), dtype=jnp.float32).astype(jnp.bfloat16)
    targets2 = jax.random.randint(k4, (N2,), 0, C2, dtype=jnp.int32)
    targets2 = targets2.at[0].set(-100)
    targets2 = targets2.at[9].set(-100)
    loss2 = cross_entropy_loss(logits2, targets2, block_n=8, block_c=128)
    jax.block_until_ready(loss2)
    ref2 = _reference(logits2, targets2)
    assert jnp.allclose(loss2, ref2, atol=1e-4, rtol=1e-4), (loss2, ref2)

    # --- test 3: ragged shapes (N=10, C=200): padded last N block, padded C tail,
    #     multi-C-tile online LSE with tail masking.
    N3, C3 = 10, 200
    logits3 = jax.random.normal(k5, (N3, C3), dtype=jnp.float32)
    targets3 = jax.random.randint(k6, (N3,), 0, C3, dtype=jnp.int32)
    targets3 = targets3.at[7].set(-100)
    loss3 = cross_entropy_loss(logits3, targets3, block_n=8, block_c=128)
    jax.block_until_ready(loss3)
    ref3 = _reference(logits3, targets3)
    assert jnp.allclose(loss3, ref3, atol=1e-5, rtol=1e-5), (loss3, ref3)

    print("KERNEL_OK")
</pallas_src>

<mosaic_0001>
module attributes {stable_mosaic.version = 11 : i64} {
  func.func @_ce_kernel(%arg0: i32, %arg1: i32, %arg2: memref<8x128xf32, #tpu.memory_space<vmem>>, %arg3: memref<8x1xi32, #tpu.memory_space<vmem>>, %arg4: memref<8x1xf32, #tpu.memory_space<vmem>>, %arg5: memref<8x1xf32, #tpu.memory_space<vmem>>, %arg6: memref<8x1xf32, #tpu.memory_space<vmem>>, %arg7: memref<8x1xf32, #tpu.memory_space<vmem>>) attributes {dimension_semantics = [#tpu.dimension_semantics<parallel>, #tpu.dimension_semantics<arbitrary>], iteration_bounds = array<i64: 1, 1>, scalar_prefetch = 0 : i64, scratch_operands = 3 : i64, tpu.core_type = #tpu.core_type<tc>, window_params = [{transform_indices = @transform_0, window_bounds = array<i64: 8, 128>}, {transform_indices = @transform_1, window_bounds = array<i64: 8, 1>}, {transform_indices = @transform_2, window_bounds = array<i64: 8, 1>}]} {
    %c0_i32 = arith.constant 0 : i32
    %0 = arith.cmpi eq, %arg1, %c0_i32 : i32
    %1 = arith.extui %0 : i1 to i32
    %c0_i32_0 = arith.constant 0 : i32
    %2 = arith.cmpi ne, %1, %c0_i32_0 : i32
    scf.if %2 {
      %cst_24 = arith.constant -3.40282347E+38 : f32
      %43 = vector.broadcast %cst_24 : f32 to vector<8x1xf32>
      %c0_25 = arith.constant 0 : index
      %c0_26 = arith.constant 0 : index
      %44 = vector.load %arg5[%c0_25, %c0_26] : memref<8x1xf32, #tpu.memory_space<vmem>>, vector<8x1xf32>
      tpu.vector_store %arg5[%c0_25, %c0_26], %43 {strides = array<i32>} : memref<8x1xf32, #tpu.memory_space<vmem>>, vector<8x1xf32>,
      %cst_27 = arith.constant 0.000000e+00 : f32
      %45 = vector.broadcast %cst_27 : f32 to vector<8x1xf32>
      %c0_28 = arith.constant 0 : index
      %c0_29 = arith.constant 0 : index
      %46 = vector.load %arg6[%c0_28, %c0_29] : memref<8x1xf32, #tpu.memory_space<vmem>>, vector<8x1xf32>
      tpu.vector_store %arg6[%c0_28, %c0_29], %45 {strides = array<i32>} : memref<8x1xf32, #tpu.memory_space<vmem>>, vector<8x1xf32>,
      %cst_30 = arith.constant 0.000000e+00 : f32
      %47 = vector.broadcast %cst_30 : f32 to vector<8x1xf32>
      %c0_31 = arith.constant 0 : index
      %c0_32 = arith.constant 0 : index
      %48 = vector.load %arg7[%c0_31, %c0_32] : memref<8x1xf32, #tpu.memory_space<vmem>>, vector<8x1xf32>
      tpu.vector_store %arg7[%c0_31, %c0_32], %47 {strides = array<i32>} : memref<8x1xf32, #tpu.memory_space<vmem>>, vector<8x1xf32>,
    } else {
    }
    %c0 = arith.constant 0 : index
    %c0_1 = arith.constant 0 : index
    %3 = vector.load %arg2[%c0, %c0_1] : memref<8x128xf32, #tpu.memory_space<vmem>>, vector<8x128xf32>
    %c0_2 = arith.constant 0 : index
    %c0_3 = arith.constant 0 : index
    %4 = vector.load %arg3[%c0_2, %c0_3] : memref<8x1xi32, #tpu.memory_space<vmem>>, vector<8x1xi32>
    %c128_i32 = arith.constant 128 : i32
    %5 = arith.muli %arg1, %c128_i32 : i32
    %6 = vector.broadcast %5 : i32 to vector<8x1xi32>
    %7 = arith.subi %4, %6 : vector<8x1xi32>
    %8 = tpu.iota {dimensions = array<i32: 1>} : vector<8x128xi32>
    %9 = vector.broadcast %7 : vector<8x1xi32> to vector<8x128xi32>
    %10 = arith.cmpi eq, %8, %9 : vector<8x128xi32>
    %cst = arith.constant 0.000000e+00 : f32
    %11 = vector.broadcast %cst : f32 to vector<8x128xf32>
    %12 = arith.select %10, %3, %11 : vector<8x128xi1>, vector<8x128xf32>
    %c0_4 = arith.constant 0 : index
    %c0_5 = arith.constant 0 : index
    %13 = vector.load %arg7[%c0_4, %c0_5] : memref<8x1xf32, #tpu.memory_space<vmem>>, vector<8x1xf32>
    %cst_6 = arith.constant dense<0.000000e+00> : vector<8xf32>
    %14 = vector.multi_reduction <add>, %12, %cst_6 [1] : vector<8x128xf32> to vector<8xf32>
    %15 = vector.shape_cast %14 : vector<8xf32> to vector<8x1xf32>
    %16 = arith.addf %13, %15 : vector<8x1xf32>
    %c0_7 = arith.constant 0 : index
    %c0_8 = arith.constant 0 : index
    %17 = vector.load %arg7[%c0_7, %c0_8] : memref<8x1xf32, #tpu.memory_space<vmem>>, vector<8x1xf32>
    tpu.vector_store %arg7[%c0_7, %c0_8], %16 {strides = array<i32>} : memref<8x1xf32, #tpu.memory_space<vmem>>, vector<8x1xf32>,
    %c0_i32_9 = arith.constant 0 : i32
    %18 = arith.cmpi eq, %arg1, %c0_i32_9 : i32
    %c32_i32 = arith.constant 32 : i32
    %c128_i32_10 = arith.constant 128 : i32
    %19 = arith.select %18, %c32_i32, %c128_i32_10 : i32
    %20 = vector.broadcast %19 : i32 to vector<8x128xi32>
    %21 = arith.cmpi slt, %8, %20 : vector<8x128xi32>
    %cst_11 = arith.constant -3.40282347E+38 : f32
    %22 = vector.broadcast %cst_11 : f32 to vector<8x128xf32>
    %23 = arith.select %21, %3, %22 : vector<8x128xi1>, vector<8x128xf32>
    %c0_12 = arith.constant 0 : index
    %c0_13 = arith.constant 0 : index
    %24 = vector.load %arg5[%c0_12, %c0_13] : memref<8x1xf32, #tpu.memory_space<vmem>>, vector<8x1xf32>
    %cst_14 = arith.constant dense<0xFF800000> : vector<8xf32>
    %25 = vector.multi_reduction <maximumf>, %23, %cst_14 [1] : vector<8x128xf32> to vector<8xf32>
    %26 = vector.shape_cast %25 : vector<8xf32> to vector<8x1xf32>
    %27 = arith.maximumf %24, %26 : vector<8x1xf32>
    %c0_15 = arith.constant 0 : index
    %c0_16 = arith.constant 0 : index
    %28 = vector.load %arg6[%c0_15, %c0_16] : memref<8x1xf32, #tpu.memory_space<vmem>>, vector<8x1xf32>
    %29 = arith.subf %24, %27 : vector<8x1xf32>
    %30 = math.exp %29 : vector<8x1xf32>
    %31 = arith.mulf %28, %30 : vector<8x1xf32>
    %32 = vector.broadcast %27 : vector<8x1xf32> to vector<8x128xf32>
    %33 = arith.subf %23, %32 : vector<8x128xf32>
    %34 = math.exp %33 : vector<8x128xf32>
    %cst_17 = arith.constant dense<0.000000e+00> : vector<8xf32>
    %35 = vector.multi_reduction <add>, %34, %cst_17 [1] : vector<8x128xf32> to vector<8xf32>
    %36 = vector.shape_cast %35 : vector<8xf32> to vector<8x1xf32>
    %37 = arith.addf %31, %36 : vector<8x1xf32>
    %c0_18 = arith.constant 0 : index
    %c0_19 = arith.constant 0 : index
    %38 = vector.load %arg6[%c0_18, %c0_19] : memref<8x1xf32, #tpu.memory_space<vmem>>, vector<8x1xf32>
    tpu.vector_store %arg6[%c0_18, %c0_19], %37 {strides = array<i32>} : memref<8x1xf32, #tpu.memory_space<vmem>>, vector<8x1xf32>,
    %c0_20 = arith.constant 0 : index
    %c0_21 = arith.constant 0 : index
    %39 = vector.load %arg5[%c0_20, %c0_21] : memref<8x1xf32, #tpu.memory_space<vmem>>, vector<8x1xf32>
    tpu.vector_store %arg5[%c0_20, %c0_21], %27 {strides = array<i32>} : memref<8x1xf32, #tpu.memory_space<vmem>>, vector<8x1xf32>,
    %c0_i32_22 = arith.constant 0 : i32
    %40 = arith.cmpi eq, %arg1, %c0_i32_22 : i32
    %41 = arith.extui %40 : i1 to i32
    %c0_i32_23 = arith.constant 0 : i32
    %42 = arith.cmpi ne, %41, %c0_i32_23 : i32
    scf.if %42 {
      %c0_24 = arith.constant 0 : index
      %c0_25 = arith.constant 0 : index
      %43 = vector.load %arg5[%c0_24, %c0_25] : memref<8x1xf32, #tpu.memory_space<vmem>>, vector<8x1xf32>
      %c0_26 = arith.constant 0 : index
      %c0_27 = arith.constant 0 : index
      %44 = vector.load %arg6[%c0_26, %c0_27] : memref<8x1xf32, #tpu.memory_space<vmem>>, vector<8x1xf32>
      %45 = math.log %44 : vector<8x1xf32>
      %46 = arith.addf %43, %45 : vector<8x1xf32>
      %c-100_i32 = arith.constant -100 : i32
      %47 = vector.broadcast %c-100_i32 : i32 to vector<8x1xi32>
      %48 = arith.cmpi ne, %4, %47 : vector<8x1xi32>
      %49 = arith.extui %48 : vector<8x1xi1> to vector<8x1xi32>
      %50 = arith.sitofp %49 : vector<8x1xi32> to vector<8x1xf32>
      %c0_28 = arith.constant 0 : index
      %c0_29 = arith.constant 0 : index
      %51 = vector.load %arg7[%c0_28, %c0_29] : memref<8x1xf32, #tpu.memory_space<vmem>>, vector<8x1xf32>
      %52 = arith.subf %46, %51 : vector<8x1xf32>
      %53 = arith.mulf %52, %50 : vector<8x1xf32>
      %c0_30 = arith.constant 0 : index
      %c0_31 = arith.constant 0 : index
      %54 = vector.load %arg4[%c0_30, %c0_31] : memref<8x1xf32, #tpu.memory_space<vmem>>, vector<8x1xf32>
      tpu.vector_store %arg4[%c0_30, %c0_31], %53 {strides = array<i32>} : memref<8x1xf32, #tpu.memory_space<vmem>>, vector<8x1xf32>,
    } else {
    }
    return
  }
  func.func @transform_0(%arg0: i32, %arg1: i32) -> (i32, i32) {
    %c0_i32 = arith.constant 0 : i32
    return %arg0, %arg1 : i32, i32
  }
  func.func @transform_1(%arg0: i32, %arg1: i32) -> (i32, i32) {
    %c0_i32 = arith.constant 0 : i32
    %c0_i32_0 = arith.constant 0 : i32
    return %arg0, %c0_i32 : i32, i32
  }
  func.func @transform_2(%arg0: i32, %arg1: i32) -> (i32, i32) {
    %c0_i32 = arith.constant 0 : i32
    %c0_i32_0 = arith.constant 0 : i32
    return %arg0, %c0_i32 : i32, i32
  }
}

</mosaic_0001>

<bundles_post_ra>
// kernel: tpu_custom_call.1
= control target key start
LH: loop header
LB: loop body
LE: loop exit
PB: predicated region body
PF: predicated region fallthrough
CT: control target
= control target key end

     0   :  { %v24_v0 = vlaneseq  ;;  %vm15_vm0 = vcmask 7168   ;;  %v94_v1 = vmov -3.4028235e+38   ;;  %v95_v5 = vmov 0   ;;  %s128_s0 = inlined_call_operand.vmem [shape: f32[8,32], index: 0, kind: input, shape index: {}]   ;;  %s129_s1 = inlined_call_operand.vmem [shape: s32[8,1], index: 1, kind: input, shape index: {}]   ;;  %s130_s2 = inlined_call_operand.vmem [shape: f32[8,1], index: 2, kind: output, shape index: {}]  }
   0x1   :  { %16 = vst.msk [vmem:[#allocation2] sm:$0xff] %vm15_vm0, %v94_v1  ;;  %v19_v2 = vld [vmem:[%s128_s0] sm:$0xff]  ;;  %86 = vset.pattern.permute.xlu0 %v95_v5  ;;  %87 = vset.pattern.permute.xlu1 %v95_v5  ;;  %v96_v6 = vmov 0.0  }
   0x2   :  { %v25_v3 = vand.u32 127, %v24_v0  ;;  %17 = vst.msk [vmem:[#allocation3] sm:$0xff] %vm15_vm0, %v96_v6  ;;  %18 = vst.msk [vmem:[#allocation4] sm:$0xff] %vm15_vm0, %v96_v6  ;;  %v20_v7 = vld [vmem:[%s129_s1] sm:$0xff] }
   0x3   :  { %27 = vperm.xlu1 %87, %v20_v7   ;;  %vm71_vm2 = vcmp.ne.s32.totalorder %v20_v7, 4294967196 }
   0x4   :  { %vm39_vm1 = vcmp.lt.s32.totalorder %v25_v3, 32  ;;  %v82_v8 = vsel %vm71_vm2, 1.0, %v96_v6 }
   0x5   :  { %v40_v4 = vsel %vm39_vm1, %v19_v2, -3.4028235e+38 }
   0x6   :  { %42 = vmax.xlane.f32.xlu0 %v40_v4 }
   0x8   :  { %v41_v9 = vld [vmem:[#allocation2] sm:$0xff] }
   0x9   :  { %v45_v21 = vld [vmem:[#allocation3] sm:$0xff]  ;;  %v31_v25 = vld [vmem:[#allocation4] sm:$0xff] }
  0x82   :  { %v28_v16 = vpop.permute.xlu1 %27 }
  0x83   :  { %vm29_vm3 = vcmp.eq.s32.totalorder %v25_v3, %v28_v16 }
  0x84   :  { %v30_v18 = vsel %vm29_vm3, %v19_v2, 0.0 }
  0x93   :  { %v43_v10 = vpop.xlane.xlu0 %42 }
  0x94   :  { %v44_v11 = vmax.f32 %v41_v9, %v43_v10 }
  0x96   :  { %v46_v12 = vsub.f32 %v41_v9, %v44_v11  ;;  %62 = vst.msk [vmem:[#allocation2] sm:$0xff] %vm15_vm0, %v44_v11  ;;  %52 = vperm.xlu0 %86, %v44_v11  }
  0x98   :  { %v47_v19 = vmul.f32 1.442695, %v46_v12 }
  0x9d   :  { %v66_v31 = vld [vmem:[#allocation2] sm:$0xff] }
 0x115   :  { %v53_v13 = vpop.permute.xlu0 %52 }
 0x116   :  { %v55_v14 = vsub.f32 %v40_v4, %v53_v13 }
 0x118   :  { %v56_v15 = vmul.f32 1.442695, %v55_v14 }
 0x11a   :  { %88 = vpow2.f32 %v56_v15 }
 0x11b   :  { %90 = vpow2.f32 %v47_v19 }
 0x124   :  { %v89_v17 = vpop.eup %88 }
 0x125   :  { %58 = vadd.xlane.f32.xlu1 %v89_v17  ;;  %v91_v20 = vpop.eup %90 }
 0x126   :  { %v49_v22 = vmul.f32 %v91_v20, %v45_v21 }
 0x129   :  { %32 = vadd.xlane.f32.xlu1 %v30_v18 }
 0x1b2   :  { %v59_v23 = vpop.xlane.xlu1 %58 }
 0x1b3   :  { %v60_v24 = vadd.f32 %v59_v23, %v49_v22 }
 0x1b5   :  { %61 = vst.msk [vmem:[#allocation3] sm:$0xff] %vm15_vm0, %v60_v24 }
 0x1b6   :  { %v33_v26 = vpop.xlane.xlu1 %32 }
 0x1b7   :  { %v34_v27 = vadd.f32 %v33_v26, %v31_v25 }
 0x1b9   :  { %36 = vst.msk [vmem:[#allocation4] sm:$0xff] %vm15_vm0, %v34_v27 }
 0x1bc   :  { %v67_v28 = vld [vmem:[#allocation3] sm:$0xff] }
 0x1bd   :  { %92 = vlog2.f32 %v67_v28 }
 0x1c0   :  { %v74_v32 = vld [vmem:[#allocation4] sm:$0xff] }
 0x1c7   :  { %v93_v29 = vpop.eup %92 }
 0x1c8   :  { %v69_v30 = vmul.f32 0.6931472, %v93_v29 }
 0x1ca   :  { %v70_v33 = vadd.f32 %v69_v30, %v66_v31 }
 0x1cc   :  { %v75_v34 = vsub.f32 %v70_v33, %v74_v32 }
 0x1ce   :  { %v76_v35 = vmul.f32 %v82_v8, %v75_v34 }
 0x1d0   :  { %77 = vst.msk [vmem:[%s130_s2] sm:$0xff] %vm15_vm0, %v76_v35 }

</bundles_post_ra>
